<compile_context>
chip_gen: v7x
topology: tpu7x:2x2x1
jax: 0.10.0
libtpu: 0.0.40
codegen_flags: <defaults>
</compile_context>

<pallas_src>
import functools

import jax
import jax.numpy as jnp
from jax import lax
from jax.experimental import pallas as pl
from jax.experimental.pallas import tpu as pltpu


def _prompt_kernel(token_position, ctx_shared, cls_block, n_ctx, seq_len, n_suffix,
                   name_lens_ref, prefix_ref, ctx_ref, suffix_ref, out_ref):
    """One grid step assembles the prompts for a block of `cls_block` classes."""
    C = cls_block
    d = out_ref.shape[-1]

    if token_position == "end":
        # Fully static assembly: one dense full-tile store (no masked sub-tile stores).
        if ctx_shared:
            ctx_blk = jnp.broadcast_to(ctx_ref[...][None], (C, n_ctx, d))
        else:
            ctx_blk = ctx_ref[...]
        out_ref[...] = jnp.concatenate([prefix_ref[...], ctx_blk, suffix_ref[...]], axis=1)
        return

    # ---- front / middle: pure data movement (no MXU, no per-class concatenate) -----
    i = pl.program_id(0)
    half = n_ctx // 2
    # Suffix row index along the sublane axis; compared against each class's name length.
    row = lax.broadcasted_iota(jnp.int32, (n_suffix, 1), 0)

    if ctx_shared:
        ctx_full = ctx_ref[...]                     # (n_ctx, d), VMEM-resident once

    def body(c, carry):
        # Clamp so a bad / padded name length can never drive an out-of-bounds store.
        nl = jnp.clip(name_lens_ref[i * C + c], 0, n_suffix)
        suf = suffix_ref[c]                         # (n_suffix, d)
        ctx_c = ctx_full if ctx_shared else ctx_ref[c]

        out_ref[c, 0:1, :] = prefix_ref[c]          # SOS row

        if token_position == "front":
            # (1) class-name tokens land at rows 1..nl (the rest of this write is
            #     overwritten by the stores below).
            out_ref[c, 1:1 + n_suffix, :] = suf
            # (2) trailing suffix (EOS/pad): rows 1+n_ctx+k for k >= nl; keep the
            #     already-correct contents for k < nl (VMEM-local read-modify-write).
            cur = out_ref[c, 1 + n_ctx:seq_len, :]
            out_ref[c, 1 + n_ctx:seq_len, :] = jnp.where(row >= nl, suf, cur)
            # (3) ctx block at dynamic offset 1 + nl (dynamic start, static size).
            out_ref[c, pl.ds(1 + nl, n_ctx), :] = ctx_c
        else:  # "middle"
            if half > 0:
                out_ref[c, 1:1 + half, :] = ctx_c[:half]          # first half of ctx
            out_ref[c, 1 + half:1 + half + n_suffix, :] = suf     # class-name rows
            cur = out_ref[c, 1 + n_ctx:seq_len, :]
            out_ref[c, 1 + n_ctx:seq_len, :] = jnp.where(row >= nl, suf, cur)
            out_ref[c, pl.ds(1 + half + nl, n_ctx - half), :] = ctx_c[half:]
        return carry

    lax.fori_loop(0, C, body, 0)


def prompt_learner_forward(ctx, prefix, suffix, name_lens, *, token_position="end",
                           n_ctx=None, idx=None, class_block=None):
    """JAX wrapper mirroring PromptLearner.forward.

    ctx       : (n_ctx, d) shared or (n_cls, n_ctx, d) per-class
    prefix    : (n_cls, 1, d)            -- token_prefix buffer
    suffix    : (n_cls, seq-1-n_ctx, d)  -- token_suffix buffer
    name_lens : (n_cls,) int             -- tokenized class-name lengths
    """
    ctx = jnp.asarray(ctx)
    prefix = jnp.asarray(prefix)
    suffix = jnp.asarray(suffix)
    if n_ctx is None:
        n_ctx = ctx.shape[-2]

    if idx is not None:                      # mirrors prefix[idx], suffix[idx], name_lens[idx]
        prefix = prefix[idx]
        suffix = suffix[idx]
        name_lens = jnp.asarray(name_lens)[idx]

    n_cls, _, ctx_dim = prefix.shape
    n_suffix = suffix.shape[1]
    seq_len = 1 + n_ctx + n_suffix

    # Common dtype so no operand is silently downcast.
    out_dtype = jnp.result_type(prefix.dtype, ctx.dtype, suffix.dtype)
    prefix = prefix.astype(out_dtype)
    suffix = suffix.astype(out_dtype)
    ctx = ctx.astype(out_dtype)
    itemsize = jnp.dtype(out_dtype).itemsize

    ctx_shared = (ctx.ndim == 2)             # keep shared ctx at its real rank (no broadcast_to)
    if not ctx_shared and ctx.shape[0] != n_cls:
        raise ValueError("per-class ctx must have leading dim n_cls")

    name_lens = jnp.asarray(name_lens, dtype=jnp.int32)

    # Class-block sizing: mem-bound kernel, so pick the biggest tile that keeps the
    # double-buffered (in + out) working set under a budget that fits all of
    # v5e (16 MiB scoped default raised below), v6e and v7x (64 MiB physical),
    # while keeping >= 2 grid steps so both v7x TensorCores get work.
    if class_block is None:
        per_class = 4 * seq_len * ctx_dim * itemsize      # in+out, double-buffered
        budget = 28 << 20
        cb = max(1, budget // per_class)
        cb = int(min(cb, 64, n_cls))
        if n_cls > 1:
            cb = min(cb, -(-n_cls // 2))                  # ceil(n_cls/2) -> >= 2 steps
        class_block = max(1, cb)
    C = max(1, min(class_block, n_cls))
    n_blocks = pl.cdiv(n_cls, C)

    # Pad name_lens so SMEM reads in a partial final class block stay in bounds.
    pad = n_blocks * C - n_cls
    if pad:
        name_lens = jnp.concatenate([name_lens, jnp.ones((pad,), jnp.int32)])

    kernel = functools.partial(_prompt_kernel, token_position, ctx_shared, C,
                               n_ctx, seq_len, n_suffix)

    if ctx_shared:
        # Constant index_map: the same (n_ctx, d) block stays resident in VMEM.
        ctx_spec = pl.BlockSpec((n_ctx, ctx_dim), lambda i, nl: (0, 0))
        ctx_blk_elems = n_ctx * ctx_dim
    else:
        ctx_spec = pl.BlockSpec((C, n_ctx, ctx_dim), lambda i, nl: (i, 0, 0))
        ctx_blk_elems = C * n_ctx * ctx_dim

    grid_spec = pltpu.PrefetchScalarGridSpec(
        num_scalar_prefetch=1,
        grid=(n_blocks,),
        in_specs=[
            pl.BlockSpec((C, 1, ctx_dim), lambda i, nl: (i, 0, 0)),        # prefix
            ctx_spec,                                                       # ctx
            pl.BlockSpec((C, n_suffix, ctx_dim), lambda i, nl: (i, 0, 0)),  # suffix
        ],
        out_specs=pl.BlockSpec((C, seq_len, ctx_dim), lambda i, nl: (i, 0, 0)),
    )

    # Scoped-VMEM limit matched to the double-buffered working set (+ headroom),
    # capped below v7x's 64 MiB physical ceiling.
    blk_elems = (C * 1 * ctx_dim + ctx_blk_elems + C * n_suffix * ctx_dim
                 + C * seq_len * ctx_dim)
    vmem_need = 2 * blk_elems * itemsize + (2 << 20)
    vmem_limit = int(min(max(vmem_need, 16 << 20), 56 << 20))

    cost = pl.CostEstimate(
        flops=0, transcendentals=0,
        bytes_accessed=int(2 * n_cls * seq_len * ctx_dim * itemsize))

    return pl.pallas_call(
        kernel,
        out_shape=jax.ShapeDtypeStruct((n_cls, seq_len, ctx_dim), out_dtype),
        grid_spec=grid_spec,
        compiler_params=pltpu.CompilerParams(
            dimension_semantics=("parallel",),
            vmem_limit_bytes=vmem_limit),
        cost_estimate=cost,
    )(name_lens, prefix, ctx, suffix)


# --------------------------- pure-JAX reference ------------------------------
def _ref_forward(ctx, prefix, suffix, name_lens, token_position, n_ctx, idx=None):
    if idx is not None:
        prefix, suffix, name_lens = prefix[idx], suffix[idx], name_lens[idx]
    n_cls = prefix.shape[0]
    if ctx.ndim == 2:
        ctx = jnp.broadcast_to(ctx[None], (n_cls,) + ctx.shape)
    if token_position == "end":
        return jnp.concatenate([prefix, ctx, suffix], axis=1)
    half = n_ctx // 2
    rows = []
    for i in range(n_cls):
        nl = int(name_lens[i])
        if token_position == "middle":
            row = jnp.concatenate(
                [prefix[i:i + 1], ctx[i:i + 1, :half], suffix[i:i + 1, :nl],
                 ctx[i:i + 1, half:], suffix[i:i + 1, nl:]], axis=1)
        elif token_position == "front":
            row = jnp.concatenate(
                [prefix[i:i + 1], suffix[i:i + 1, :nl], ctx[i:i + 1],
                 suffix[i:i + 1, nl:]], axis=1)
        else:
            raise ValueError(token_position)
        rows.append(row)
    return jnp.concatenate(rows, axis=0)


if __name__ == "__main__":
    # Small synthetic PromptLearner configuration (deterministic init, no checkpoint).
    n_cls, n_ctx, ctx_dim, seq_len = 4, 4, 128, 16
    n_suffix = seq_len - 1 - n_ctx            # 11

    key = jax.random.PRNGKey(0)
    k1, k2, k3, k4 = jax.random.split(key, 4)
    # token_prefix / token_suffix would come from clip_model.token_embedding;
    # here they are deterministic random embeddings of the same shapes.
    prefix = jax.random.normal(k1, (n_cls, 1, ctx_dim), dtype=jnp.float32)
    suffix = jax.random.normal(k2, (n_cls, n_suffix, ctx_dim), dtype=jnp.float32)
    ctx_2d = jax.random.normal(k3, (n_ctx, ctx_dim), dtype=jnp.float32)
    ctx_3d = jax.random.normal(k4, (n_cls, n_ctx, ctx_dim), dtype=jnp.float32)
    # name_lens: per-class tokenized name length (1 .. n_suffix-2 so EOS fits).
    name_lens = (jnp.arange(n_cls, dtype=jnp.int32) % (n_suffix - 2)) + 1

    ok = True

    # token_position = 'end', shared 2D ctx (default CoOp path; single fused store).
    out = prompt_learner_forward(ctx_2d, prefix, suffix, name_lens,
                                 token_position="end", n_ctx=n_ctx)
    jax.block_until_ready(out)
    ref = _ref_forward(ctx_2d, prefix, suffix, name_lens, "end", n_ctx)
    ok &= bool(jnp.allclose(out, ref, atol=1e-5))

    # token_position = 'middle' and 'front', per-class 3D ctx (copy/RMW assembly).
    for pos in ("middle", "front"):
        out = prompt_learner_forward(ctx_3d, prefix, suffix, name_lens,
                                     token_position=pos, n_ctx=n_ctx)
        jax.block_until_ready(out)
        ref = _ref_forward(ctx_3d, prefix, suffix, name_lens, pos, n_ctx)
        ok &= bool(jnp.allclose(out, ref, atol=1e-5))

    # token_position = 'front' with shared 2D ctx (ctx stays VMEM-resident).
    out = prompt_learner_forward(ctx_2d, prefix, suffix, name_lens,
                                 token_position="front", n_ctx=n_ctx)
    jax.block_until_ready(out)
    ref = _ref_forward(ctx_2d, prefix, suffix, name_lens, "front", n_ctx)
    ok &= bool(jnp.allclose(out, ref, atol=1e-5))

    # Non-divisible class blocking (partial last block): class_block=3 over 4 classes.
    out = prompt_learner_forward(ctx_3d, prefix, suffix, name_lens,
                                 token_position="middle", n_ctx=n_ctx, class_block=3)
    jax.block_until_ready(out)
    ref = _ref_forward(ctx_3d, prefix, suffix, name_lens, "middle", n_ctx)
    ok &= bool(jnp.allclose(out, ref, atol=1e-5))

    # idx selection path (subset of classes), token_position = 'end'.
    idx = jnp.array([2, 0], dtype=jnp.int32)
    out = prompt_learner_forward(ctx_3d[idx], prefix, suffix, name_lens,
                                 token_position="end", n_ctx=n_ctx, idx=idx)
    jax.block_until_ready(out)
    ref = _ref_forward(ctx_3d[idx], prefix, suffix, name_lens, "end", n_ctx, idx=idx)
    ok &= bool(jnp.allclose(out, ref, atol=1e-5))

    # TODO(synk): tokenizer / clip.tokenize / token_embedding from __init__ are host-side
    # preprocessing with no Pallas equivalent; represented by deterministic buffers above.
    if ok:
        print("KERNEL_OK")
    else:
        print("KERNEL_MISMATCH")
</pallas_src>

<mosaic_0001>
module attributes {stable_mosaic.version = 11 : i64} {
  func.func @_prompt_kernel(%arg0: i32, %arg1: memref<4xi32, #tpu.memory_space<smem>>, %arg2: memref<2x1x128xf32, #tpu.memory_space<vmem>>, %arg3: memref<4x128xf32, #tpu.memory_space<vmem>>, %arg4: memref<2x11x128xf32, #tpu.memory_space<vmem>>, %arg5: memref<2x16x128xf32, #tpu.memory_space<vmem>>) attributes {dimension_semantics = [#tpu.dimension_semantics<parallel>], iteration_bounds = array<i64: 2>, scalar_prefetch = 1 : i64, scratch_operands = 0 : i64, tpu.core_type = #tpu.core_type<tc>, window_params = [{transform_indices = @transform_0, window_bounds = array<i64: 2, 1, 128>}, {pipeline_mode = #tpu.pipeline_mode<synchronous>, transform_indices = @transform_1, window_bounds = array<i64: 4, 128>}, {transform_indices = @transform_2, window_bounds = array<i64: 2, 11, 128>}, {transform_indices = @transform_3, window_bounds = array<i64: 2, 16, 128>}]} {
    %c0 = arith.constant 0 : index
    %c0_0 = arith.constant 0 : index
    %0 = vector.load %arg3[%c0, %c0_0] : memref<4x128xf32, #tpu.memory_space<vmem>>, vector<4x128xf32>
    %1 = vector.shape_cast %0 : vector<4x128xf32> to vector<1x4x128xf32>
    %2 = vector.shape_cast %1 : vector<1x4x128xf32> to vector<1x4x128xf32>
    %3 = vector.broadcast %2 : vector<1x4x128xf32> to vector<2x4x128xf32>
    %c0_1 = arith.constant 0 : index
    %c0_2 = arith.constant 0 : index
    %c0_3 = arith.constant 0 : index
    %4 = vector.load %arg2[%c0_1, %c0_2, %c0_3] : memref<2x1x128xf32, #tpu.memory_space<vmem>>, vector<2x1x128xf32>
    %c0_4 = arith.constant 0 : index
    %c0_5 = arith.constant 0 : index
    %c0_6 = arith.constant 0 : index
    %5 = vector.load %arg4[%c0_4, %c0_5, %c0_6] : memref<2x11x128xf32, #tpu.memory_space<vmem>>, vector<2x11x128xf32>
    %6 = tpu.concatenate %4, %3, %5 in 1 : vector<2x1x128xf32>, vector<2x4x128xf32>, vector<2x11x128xf32> -> vector<2x16x128xf32>
    %c0_7 = arith.constant 0 : index
    %c0_8 = arith.constant 0 : index
    %c0_9 = arith.constant 0 : index
    %7 = vector.load %arg5[%c0_7, %c0_8, %c0_9] : memref<2x16x128xf32, #tpu.memory_space<vmem>>, vector<2x16x128xf32>
    tpu.vector_store %arg5[%c0_7, %c0_8, %c0_9], %6 {strides = array<i32>} : memref<2x16x128xf32, #tpu.memory_space<vmem>>, vector<2x16x128xf32>,
    return
  }
  func.func @transform_0(%arg0: i32, %arg1: memref<4xi32, #tpu.memory_space<smem>>) -> (i32, i32, i32) {
    %c0_i32 = arith.constant 0 : i32
    %c0_i32_0 = arith.constant 0 : i32
    %c0_i32_1 = arith.constant 0 : i32
    return %arg0, %c0_i32, %c0_i32_0 : i32, i32, i32
  }
  func.func @transform_1(%arg0: i32, %arg1: memref<4xi32, #tpu.memory_space<smem>>) -> (i32, i32) {
    %c0_i32 = arith.constant 0 : i32
    %c0_i32_0 = arith.constant 0 : i32
    %c0_i32_1 = arith.constant 0 : i32
    return %c0_i32, %c0_i32_0 : i32, i32
  }
  func.func @transform_2(%arg0: i32, %arg1: memref<4xi32, #tpu.memory_space<smem>>) -> (i32, i32, i32) {
    %c0_i32 = arith.constant 0 : i32
    %c0_i32_0 = arith.constant 0 : i32
    %c0_i32_1 = arith.constant 0 : i32
    return %arg0, %c0_i32, %c0_i32_0 : i32, i32, i32
  }
  func.func @transform_3(%arg0: i32, %arg1: memref<4xi32, #tpu.memory_space<smem>>) -> (i32, i32, i32) {
    %c0_i32 = arith.constant 0 : i32
    %c0_i32_0 = arith.constant 0 : i32
    %c0_i32_1 = arith.constant 0 : i32
    return %arg0, %c0_i32, %c0_i32_0 : i32, i32, i32
  }
}

</mosaic_0001>

<bundles_post_ra>
// kernel: tpu_custom_call.1
= control target key start
LH: loop header
LB: loop body
LE: loop exit
PB: predicated region body
PF: predicated region fallthrough
CT: control target
= control target key end

     0   :  { %s607_s0 = inlined_call_operand.vmem [shape: s32[4], index: 0, kind: input, shape index: {}]   ;;  %s608_s1 = inlined_call_operand.vmem [shape: f32[4,1,128], index: 1, kind: input, shape index: {}]   ;;  %s609_s2 = inlined_call_operand.vmem [shape: f32[4,128], index: 2, kind: input, shape index: {}]   ;;  %s610_s3 = inlined_call_operand.vmem [shape: f32[4,11,128], index: 3, kind: input, shape index: {}]   ;;  %s611_s4 = inlined_call_operand.hbm [shape: f32[4,16,128], index: 4, kind: output, shape index: {}]  }
   0x1   :  { %s9_s17 = sshll.u32 %s607_s0, 4  ;;  %s10_s17 = int_to_ptr.vmem [resolvable:$true] %s9_s17 }
   0x2   :  { %s381_s18 = scalar_lea.vmem %s10_s17, 16  ;;  %p386_p1 = scmp.lt.s32.totalorder %s10_s17, %s10_s17 }
   0x3   :  { %p382_p0 = scmp.ne.s32.totalorder %s10_s17, %s381_s18  ;;  %p387_p2 = scmp.lt.s32.totalorder %s381_s18, %s381_s18 }
   0x5   :  { %p388_p3 = por %p387_p2, %p386_p1 }
   0x7   :  { %p389_p4 = pnand %p388_p3, %p382_p0 }
   0x9   :  { %392 = shalt.err (!%p389_p4)  }
   0xa   :  { %s459_s19 = smov [#allocation3]  }
   0xb   :  { %12 = dma.vmem_to_smem %s10_s17, 16, %s459_s19, [#allocation2] }
   0xc   :  { %437 = dma.done.wait [#allocation2], 16 }
   0xd   :  { %438 = vsyncadd [#allocation2], 4294967280 }
   0xe   :  { %14 = sfence }
   0xf   :  { %15 = vsyncpa [#allocation5], 0 }
  0x10   :  { %17 = vsyncpa [#allocation5 + $0x1], 0  ;;  %s491_s20 = smov 0   ;;  %s493_s21 = smov 0  }
  0x11   :  { %s495_s0 = smov 0   ;;  %s497_s22 = smov 0  }
  0x12 LB: > { %s512_s23 = sadd.s32 4294967295, %s457_s22   ;;  %s321_s24 = sadd.s32 4294967294, %s457_s22   ;;  %s457_s22 = sphi %s497_s22, %s617_s22   ;;  %s453_s0 = sphi %s495_s0, %s616_s0   ;;  %s449_s21 = sphi %s493_s21, %s615_s21   ;;  %s445_s20 = sphi %s491_s20, %s614_s20  }
  0x13   : > { %s516_s25 = sadd.s32 1, %s457_s22   ;;  %s103_s26 = sadd.s32 1, %s453_s0 }
  0x14   : > { %s100_s27 = ssub.s32 %s457_s22, %s516_s25  ;;  %p113_p5 = scmp.ne.s32.totalorder %s453_s0, %s449_s21 }
  0x15   : > { %p101_p6 = scmp.eq.s32.totalorder %s100_s27, 0  ;;  %p114_p7 = scmp.eq.s32.totalorder %s512_s23, 1 }
  0x16   : > { %p119_p8 = scmp.ne.s32.totalorder %s449_s21, %s445_s20  ;;  %p120_p9 = scmp.eq.s32.totalorder %s321_s24, 1 }
  0x17   : > { %s527_s28 = scalar_select %p101_p6, %s453_s0, %s103_s26  }
  0x18   : > { %p529_p10 = por %p114_p7, %p113_p5  ;;  %p533_p11 = por %p120_p9, %p119_p8 }
  0x19   : > { %p324_p12 = scmp.ge.s32.totalorder %s457_s22, 1  ;;  %p159_p13 = scmp.lt.s32.totalorder %s457_s22, 3 }
  0x1b   : > { %p160_p0 = pnand %p324_p12, %p159_p13 }
  0x1c   : > { %s185_s5 = sand.u32 (!%p160_p0), 1, %s449_s21   ;;  %s326_s6 = sshll.u32 (!%p160_p0), %s512_s23, 1  ;;  %v201_v0 = vld [vmem:[%s609_s2] sm:$0xf] (!%p160_p0)  ;;  %vm226_vm0 = vcmask (!%p160_p0), 1040384   ;;  %vm215_vm1 = vcmask (!%p160_p0), 1044480  }
  0x1d   : > { %163 = sbr.rel (%p160_p0) target bundleno = 61 (0x3d), region = 32  ;;  %s325_s9 = sshll.u32 (!%p160_p0), %s185_s5, 5  ;;  %v209_v1 = vrot.slane (!%p160_p0), %v201_v0, 7 }
  0x1e   : > { %p189_p1 = scmp.lt.s32.totalorder (!%p160_p0), %s326_s6, 3  ;;  %s187_s10 = scalar_lea.vmem (!%p160_p0), [#allocation4], %s325_s9 }
  0x1f   : > { %s250_s11 = sshll.u32 (!%p160_p0), %s187_s10, 4  ;;  %s338_s19 = sshll.u32 (!%p160_p0), %s512_s23, 9  ;;  %s553_s11 = int_to_ptr.vmem [resolvable:$true] %s250_s11 }
  0x20   : > { %s558_s23 = scalar_lea.hbm (!%p160_p0), %s611_s4, %s338_s19  ;;  %s566_s27 = scalar_lea.sflag (!%p160_p0), [#allocation5], %s185_s5 }
  0x21   : > { %s460_s7 = smov (!%p160_p0), [#allocation4]  }
  0x22   : > { %s397_s8 = sshll.u32 (!%p160_p0), %s460_s7, 4  ;;  %s398_s8 = int_to_ptr.vmem [resolvable:$false] %s397_s8 }
  0x23   : > { %s399_s9 = scalar_lea.vmem (!%p160_p0), %s398_s8, 1024  ;;  %p400_p5 = scmp.lt.s32.totalorder (!%p160_p0), %s553_s11, %s398_s8 }
  0x24   : > { %s619_s6 = smov (!%p189_p1, %s326_s6), 3 }
  0x25   : > { %s191_s14 = scalar_lea.vmem %s608_s1, %s619_s6  ;;  %s336_s15 = sshll.u32 %s619_s6, 4 }
  0x26   : > { %s198_s18 = scalar_lea.vmem %s610_s3, %s336_s15  ;;  %v202_v2 = vld [vmem:[%s191_s14] sm:$0x1]  ;;  %v203_v3 = vld [vmem:[%s191_s14 + $0x1] sm:$0x1]  ;;  %s393_s6 = scalar_lea.vmem %s553_s11, 512 }
  0x27   : > { %v204_v4 = vld [vmem:[%s198_s18] sm:$0xff]  ;;  %v227_v5 = vsel %vm226_vm0, %v202_v2, %v209_v1  ;;  %v205_v6 = vld [vmem:[%s198_s18 + $0x8] sm:$0x7]  ;;  %v206_v7 = vld [vmem:[%s198_s18 + $0x10] sm:$0xff]  ;;  %v228_v8 = vsel %vm226_vm0, %v203_v3, %v209_v1  ;;  %p394_p2 = scmp.ne.s32.totalorder %s553_s11, %s393_s6  ;;  %p401_p6 = scmp.lt.s32.totalorder %s399_s9, %s393_s6 }
  0x28   : > { %v216_v9 = vrot.slane %v204_v4, 3  ;;  %v217_v10 = vrot.slane %v205_v6, 3  ;;  %v219_v11 = vrot.slane %v206_v7, 3  ;;  %v207_v12 = vld [vmem:[%s198_s18 + $0x18] sm:$0x7] }
  0x29   : > { %v220_v13 = vrot.slane %v207_v12, 3  ;;  %p395_p3 = pnand %p394_p2, %p529_p10  ;;  %p402_p7 = por %p401_p6, %p400_p5 }
  0x2a   : > { %v229_v14 = vsel %vm215_vm1, %v227_v5, %v216_v9  ;;  %v218_v15 = vsel %vm215_vm1, %v216_v9, %v217_v10  ;;  %v230_v16 = vsel %vm215_vm1, %v228_v8, %v219_v11 }
  0x2b   : > { %231 = vst [vmem:[%s187_s10] sm:$0xff] %v229_v14  ;;  %232 = vst [vmem:[%s187_s10 + $0x8] sm:$0xff] %v218_v15  ;;  %v221_v17 = vsel %vm215_vm1, %v219_v11, %v220_v13  ;;  %p396_p4 = pneg %p395_p3 }
  0x2c   : > { %233 = vst [vmem:[%s187_s10 + $0x10] sm:$0xff] %v230_v16  ;;  %234 = vst [vmem:[%s187_s10 + $0x18] sm:$0xff] %v221_v17 }
  0x2d   : > { %p403_p8 = pnand %p402_p7, %p396_p4 }
  0x2f   : > { %406 = shalt.err (!%p403_p8)
}
  0x30   : > { %s407_s5 = scalar_lea.hbm %s558_s23, 512  ;;  %s411_s13 = scalar_lea.hbm %s611_s4, 1024 }
  0x31   : > { %p408_p9 = scmp.ne.s32.totalorder %s558_s23, %s407_s5  ;;  %p412_p0 = scmp.lt.u32.totalorder %s558_s23, %s611_s4 }
  0x32   : > { %p413_p1 = scmp.lt.u32.totalorder %s411_s13, %s407_s5  ;;  %p415_p3 = scmp.lt.u32.totalorder %s407_s5, %s558_s23 }
  0x33   : > { %p409_p12 = pnand %p408_p9, %p529_p10 }
  0x34   : > { %p414_p2 = por %p413_p1, %p412_p0 }
  0x35   : > { %p410_p13 = pneg %p409_p12 }
  0x36   : > { %p416_p4 = por %p415_p3, %p414_p2 }
  0x38   : > { %p417_p5 = pnand %p416_p4, %p410_p13 }
  0x3a   : > { %420 = shalt.err (!%p417_p5)
}
  0x3b   : > { %s461_s16 = smov 128   ;;  %s462_s17 = smov 8  }
  0x3c   : > { %339 = dma.vmem_to_hbm [thread:$0]  (%p529_p10), %s553_s11, 512, %s558_s23, %s566_s27, %s461_s16, %s461_s16, %s462_s17  }
  0x3d PF: > { %p345_p6 = scmp.ge.s32.totalorder %s457_s22, 2  ;;  %s265_s18 = sand.u32 1, %s445_s20  }
  0x3e   : > { %s266_s19 = scalar_lea.sflag [#allocation5], %s265_s18 }
  0x3f   : > { %p342_p7 = pnand %p345_p6, %p533_p11 }
  0x41   : > { %440 = dma.done.wait (!%p342_p7), %s266_s19, 512  }
  0x42   : > { %442 = vsyncadd (!%p342_p7), %s266_s19, 4294966784  ;;  %p20_p8 = scmp.ge.s32.totalorder %s516_s25, 4   ;;  %s614_s20 = smov %s449_s21 }
  0x43   : > { %s615_s21 = smov %s453_s0  ;;  %s616_s0 = smov %s527_s28 }
  0x44   : > { %s617_s22 = smov %s516_s25  ;;  %22 = sbr.rel (!%p20_p8) target bundleno = 18 (0x12), region = 70 }
  0x4b   :  { %271 = vsyncpa [#allocation5], 1 }
  0x4c   :  { %273 = vsyncpa [#allocation5 + $0x1], 1 }

</bundles_post_ra>
